<compile_context>
chip_gen: v7x
topology: tpu7x:2x2x1
jax: 0.10.0
libtpu: 0.0.40
codegen_flags: <defaults>
</compile_context>

<pallas_src>
import jax
import jax.numpy as jnp
from jax.experimental import pallas as pl
from jax.experimental.pallas import tpu as pltpu

B3_CHANNEL_N = 384
OUT_CHANNEL_N = 320
BN_EPS = 0.001
_MIB = 1 << 20


def _conv1x1_bn_kernel(x_ref, w_ref, shift_ref, o_ref):
    # x_ref:     (1, C_in, TL)  activation slab: channels on sublanes, pixels on lanes
    # w_ref:     (C_out, C_in)  BN-scale-folded weights, resident across the grid
    # shift_ref: (C_out, 1)     fp32 folded conv-bias + BN shift
    # o_ref:     (1, C_out, TL)
    x = x_ref[0]
    if x.dtype != w_ref.dtype:
        # Cast to the MXU dtype in-kernel (cheap VPU op hidden under DMA) instead
        # of a separate full read+write cast pass over HBM in the wrapper.
        x = x.astype(w_ref.dtype)
    acc = jnp.dot(w_ref[...], x, preferred_element_type=jnp.float32)
    # shift stays fp32 and is added to the fp32 accumulator before the final cast.
    o_ref[0] = (acc + shift_ref[...]).astype(o_ref.dtype)


def _tpu_generation():
    try:
        kind = jax.devices()[0].device_kind.lower()
    except Exception:
        return 0
    for g in (7, 6, 5, 4, 3, 2):
        if ("v%d" % g) in kind:
            return g
    return 0


def _lane_budget_and_min_steps():
    """(VMEM working-set budget, vmem_limit_bytes or None, min parallel grid steps)."""
    gen = _tpu_generation()
    if gen >= 7:
        # v7x: 3.2 TB/s HBM makes the ~0.35 us/step overhead significant -> big
        # tiles.  ~36 MiB working set needs vmem_limit_bytes above the 32 MiB
        # default scoped VMEM but stays well under the 64 MiB physical VMEM.
        # 2 TensorCores -> want >= 2 parallel grid steps.
        return 36 * _MIB, 48 * _MIB, 2
    if gen == 6:
        return 26 * _MIB, None, 1  # under v6e's 32 MiB default scoped VMEM
    return 12 * _MIB, None, 1      # v5e (and unknown): 16 MiB default scoped VMEM


def _pick_lane_tile(lanes, c_in, c_out, in_dtype, compute_dtype, out_dtype,
                    budget_bytes, min_steps):
    """Tile size along the lane (pixel) axis: biggest multiple of 128 whose
    double-buffered working set fits the VMEM budget (or the full extent)."""
    in_sz = jnp.dtype(in_dtype).itemsize
    cd_sz = jnp.dtype(compute_dtype).itemsize
    out_sz = jnp.dtype(out_dtype).itemsize
    # Double-buffered activation/output tiles + fp32 accumulator (+ in-kernel
    # bf16 cast temp when the input arrives as fp32).
    per_lane = 2 * (c_in * in_sz + c_out * out_sz) + c_out * 4
    if in_sz != cd_sz:
        per_lane += c_in * cd_sz
    cap = max(128, (budget_bytes // per_lane) // 128 * 128)
    tl = lanes if lanes <= cap else cap
    if min_steps > 1 and lanes >= min_steps * 128:
        # Ensure >= min_steps grid steps along this (parallel) axis while keeping
        # the tile a multiple of 128 (unmasked lane-dense stores).
        tl = min(tl, max(128, (lanes // min_steps) // 128 * 128))
    return tl


def conv1x1_bn(x_nchw, weight, bias, gamma, beta, running_mean, running_var,
               eps=BN_EPS, compute_dtype=jnp.bfloat16, out_dtype=jnp.bfloat16,
               small_map_pixels=512):
    """Fused 1x1 Conv2d + BatchNorm2d (inference semantics), NCHW in / NCHW out."""
    n, c_in, h, w = x_nchw.shape
    c_out = weight.shape[0]
    p = h * w

    # Fold BN (eval mode) into the conv:
    #   BN(y) = (y - mean) * gamma / sqrt(var + eps) + beta,  y = W x + b
    #   => out = (scale * W) x + ((b - mean) * scale + beta)
    scale = (gamma / jnp.sqrt(running_var + eps)).astype(jnp.float32)        # (C_out,)
    w_mat = weight.reshape(c_out, c_in).astype(jnp.float32)
    w_scaled = (scale[:, None] * w_mat).astype(compute_dtype)                # (C_out, C_in)
    shift = ((bias - running_mean) * scale + beta).astype(jnp.float32)
    shift = shift.reshape(c_out, 1)                                          # (C_out, 1)

    budget, vmem_limit, min_steps = _lane_budget_and_min_steps()

    use_slab = p < small_map_pixels
    if use_slab:
        # Small feature maps (EfficientNet-b3 deployment case): a per-image grid
        # means masked (<128-lane) stores and ~0.35 us of fixed overhead per
        # image on a few-microsecond workload.  Fold the batch into the lane
        # axis instead and run one lane-dense (C_out,C_in)@(C_in, N*H*W) matmul.
        # The transposes below touch only the small feature map and are cheap.
        # TODO(synk): have the encoder emit a (C_in, N*H*W) slab directly so
        # these wrapper transposes disappear entirely.
        x = x_nchw.reshape(n, c_in, p).transpose(1, 0, 2).reshape(1, c_in, n * p)
        b_dim, lanes = 1, n * p
    else:
        # Large feature maps: stay NCHW-native; (N,C,H,W)->(N,C,H*W) is a free
        # reshape and each image is a (C_out,C_in)@(C_in,H*W) matmul.
        x = x_nchw.reshape(n, c_in, p)
        b_dim, lanes = n, p

    lane_min_steps = 1 if b_dim >= min_steps else min_steps
    tl = _pick_lane_tile(lanes, c_in, c_out, x.dtype, compute_dtype, out_dtype,
                         budget, lane_min_steps)
    num_l = pl.cdiv(lanes, tl)

    in_sz = jnp.dtype(x.dtype).itemsize
    w_sz = jnp.dtype(compute_dtype).itemsize
    out_sz = jnp.dtype(out_dtype).itemsize
    cost = pl.CostEstimate(
        flops=2 * b_dim * lanes * c_in * c_out,
        transcendentals=0,
        bytes_accessed=(b_dim * lanes * c_in * in_sz      # fp32 activations (no wrapper cast)
                        + c_out * c_in * w_sz             # resident weights
                        + b_dim * lanes * c_out * out_sz),
    )

    out = pl.pallas_call(
        _conv1x1_bn_kernel,
        out_shape=jax.ShapeDtypeStruct((b_dim, c_out, lanes), out_dtype),
        grid_spec=pltpu.PrefetchScalarGridSpec(
            num_scalar_prefetch=0,
            grid=(b_dim, num_l),
            in_specs=[
                pl.BlockSpec((1, c_in, tl), lambda b, j: (b, 0, j)),   # activation slab
                pl.BlockSpec((c_out, c_in), lambda b, j: (0, 0)),      # resident weights
                pl.BlockSpec((c_out, 1), lambda b, j: (0, 0)),         # resident shift
            ],
            out_specs=pl.BlockSpec((1, c_out, tl), lambda b, j: (b, 0, j)),
        ),
        compiler_params=pltpu.CompilerParams(
            dimension_semantics=("parallel", "parallel"),
            vmem_limit_bytes=vmem_limit),
        cost_estimate=cost,
    )(x, w_scaled, shift)

    if use_slab:
        out = out.reshape(c_out, n, p).transpose(1, 0, 2)   # -> (N, C_out, P)
    return out.reshape(n, c_out, h, w)


def chara_discriminator_forward(encoder_features_nchw, params,
                                compute_dtype=jnp.bfloat16,
                                out_dtype=jnp.bfloat16):
    # TODO(synk): the EfficientNet-b3 `chara_encoder` backbone relies on external
    # code (get_model_params / EfficientNetEncoder) not provided with the module;
    # the kernel consumes the encoder feature map (B3_CHANNEL_N channels) directly.
    return conv1x1_bn(
        encoder_features_nchw,
        params["conv_w"], params["conv_b"],
        params["bn_gamma"], params["bn_beta"],
        params["bn_mean"], params["bn_var"],
        compute_dtype=compute_dtype, out_dtype=out_dtype,
    )


def _init_params(key):
    k0, k1, k2, k3, k4, k5 = jax.random.split(key, 6)
    conv_w = 0.05 * jax.random.normal(k0, (OUT_CHANNEL_N, B3_CHANNEL_N, 1, 1), jnp.float32)
    conv_b = 0.01 * jax.random.normal(k1, (OUT_CHANNEL_N,), jnp.float32)
    bn_gamma = 1.0 + 0.1 * jax.random.normal(k2, (OUT_CHANNEL_N,), jnp.float32)
    bn_beta = 0.1 * jax.random.normal(k3, (OUT_CHANNEL_N,), jnp.float32)
    bn_mean = 0.1 * jax.random.normal(k4, (OUT_CHANNEL_N,), jnp.float32)
    bn_var = jnp.abs(1.0 + 0.1 * jax.random.normal(k5, (OUT_CHANNEL_N,), jnp.float32))
    return dict(conv_w=conv_w, conv_b=conv_b, bn_gamma=bn_gamma, bn_beta=bn_beta,
                bn_mean=bn_mean, bn_var=bn_var)


def _reference(feat_nchw, prm):
    n, c_in, h, w = feat_nchw.shape
    x = feat_nchw.reshape(n, c_in, h * w)
    w_mat = prm["conv_w"].reshape(OUT_CHANNEL_N, c_in)
    y = jnp.einsum("oc,ncp->nop", w_mat, x) + prm["conv_b"][None, :, None]
    y = (y - prm["bn_mean"][None, :, None]) / jnp.sqrt(prm["bn_var"][None, :, None] + BN_EPS)
    y = y * prm["bn_gamma"][None, :, None] + prm["bn_beta"][None, :, None]
    return y.reshape(n, OUT_CHANNEL_N, h, w)


if __name__ == "__main__":
    key = jax.random.PRNGKey(0)
    kf, kf2, kp = jax.random.split(key, 3)
    params = _init_params(kp)

    # ---- Deployment-like shape: batch=2, 384 channels, 8x8 spatial (slab path) ----
    feat = jax.random.normal(kf, (2, B3_CHANNEL_N, 8, 8), jnp.float32)
    ref = _reference(feat, params)

    # Strict fp32 verification path.
    out_f32 = chara_discriminator_forward(feat, params,
                                          compute_dtype=jnp.float32,
                                          out_dtype=jnp.float32)
    out_f32 = jax.block_until_ready(out_f32)
    assert out_f32.shape == (2, OUT_CHANNEL_N, 8, 8), out_f32.shape
    assert jnp.allclose(out_f32, ref, atol=1e-4, rtol=1e-4), "fp32 mismatch vs JAX reference"

    # Fast default path: fp32 input fed straight to the kernel (in-kernel bf16
    # cast), bf16 MXU with fp32 accumulation, bf16 output.
    out_bf16 = chara_discriminator_forward(feat, params)
    out_bf16 = jax.block_until_ready(out_bf16)
    assert out_bf16.shape == (2, OUT_CHANNEL_N, 8, 8), out_bf16.shape
    assert out_bf16.dtype == jnp.bfloat16, out_bf16.dtype
    assert jnp.allclose(out_bf16.astype(jnp.float32), ref, atol=1e-1, rtol=1e-1), \
        "bf16 mismatch vs JAX reference (slab path)"

    # ---- Larger spatial map (>=512 px) exercises the per-image NCHW path ----
    feat2 = jax.random.normal(kf2, (2, B3_CHANNEL_N, 24, 24), jnp.float32)
    ref2 = _reference(feat2, params)
    out2 = chara_discriminator_forward(feat2, params)
    out2 = jax.block_until_ready(out2)
    assert out2.shape == (2, OUT_CHANNEL_N, 24, 24), out2.shape
    assert jnp.allclose(out2.astype(jnp.float32), ref2, atol=1e-1, rtol=1e-1), \
        "bf16 mismatch vs JAX reference (per-image path)"

    print("KERNEL_OK")
</pallas_src>

<mosaic_0001>
module attributes {stable_mosaic.version = 11 : i64} {
  func.func @_conv1x1_bn_kernel(%arg0: i32, %arg1: i32, %arg2: memref<1x384x128xf32, #tpu.memory_space<vmem>>, %arg3: memref<320x384xf32, #tpu.memory_space<vmem>>, %arg4: memref<320x1xf32, #tpu.memory_space<vmem>>, %arg5: memref<1x320x128xf32, #tpu.memory_space<vmem>>) attributes {dimension_semantics = [#tpu.dimension_semantics<parallel>, #tpu.dimension_semantics<parallel>], iteration_bounds = array<i64: 1, 1>, scalar_prefetch = 0 : i64, scratch_operands = 0 : i64, tpu.core_type = #tpu.core_type<tc>, window_params = [{transform_indices = @transform_0, window_bounds = array<i64: 1, 384, 128>}, {pipeline_mode = #tpu.pipeline_mode<synchronous>, transform_indices = @transform_1, window_bounds = array<i64: 320, 384>}, {pipeline_mode = #tpu.pipeline_mode<synchronous>, transform_indices = @transform_2, window_bounds = array<i64: 320, 1>}, {transform_indices = @transform_3, window_bounds = array<i64: 1, 320, 128>}]} {
    %c0 = arith.constant 0 : index
    %c0_0 = arith.constant 0 : index
    %c0_1 = arith.constant 0 : index
    %0 = vector.load %arg2[%c0, %c0_0, %c0_1] : memref<1x384x128xf32, #tpu.memory_space<vmem>>, vector<1x384x128xf32>
    %1 = vector.shape_cast %0 : vector<1x384x128xf32> to vector<384x128xf32>
    %c0_2 = arith.constant 0 : index
    %c0_3 = arith.constant 0 : index
    %2 = vector.load %arg3[%c0_2, %c0_3] : memref<320x384xf32, #tpu.memory_space<vmem>>, vector<320x384xf32>
    %cst = arith.constant dense<0.000000e+00> : vector<320x128xf32>
    %3 = tpu.matmul %2, %1, %cst {dimension_numbers = #tpu.dot_dimension_numbers<[1], [0], [0], [1], [0, 0, 1, 1], [], []>} : vector<320x384xf32>, vector<384x128xf32>, vector<320x128xf32> -> vector<320x128xf32>
    %c0_4 = arith.constant 0 : index
    %c0_5 = arith.constant 0 : index
    %4 = vector.load %arg4[%c0_4, %c0_5] : memref<320x1xf32, #tpu.memory_space<vmem>>, vector<320x1xf32>
    %5 = vector.broadcast %4 : vector<320x1xf32> to vector<320x128xf32>
    %6 = arith.addf %3, %5 : vector<320x128xf32>
    %c0_6 = arith.constant 0 : index
    %c0_7 = arith.constant 0 : index
    %c0_8 = arith.constant 0 : index
    %7 = vector.load %arg5[%c0_6, %c0_7, %c0_8] : memref<1x320x128xf32, #tpu.memory_space<vmem>>, vector<1x320x128xf32>
    %8 = vector.shape_cast %7 : vector<1x320x128xf32> to vector<320x128xf32>
    %9 = vector.shape_cast %6 : vector<320x128xf32> to vector<1x320x128xf32>
    tpu.vector_store %arg5[%c0_6, %c0_7, %c0_8], %9 {strides = array<i32>} : memref<1x320x128xf32, #tpu.memory_space<vmem>>, vector<1x320x128xf32>,
    return
  }
  func.func @transform_0(%arg0: i32, %arg1: i32) -> (i32, i32, i32) {
    %c0_i32 = arith.constant 0 : i32
    %c0_i32_0 = arith.constant 0 : i32
    return %arg0, %c0_i32, %arg1 : i32, i32, i32
  }
  func.func @transform_1(%arg0: i32, %arg1: i32) -> (i32, i32) {
    %c0_i32 = arith.constant 0 : i32
    %c0_i32_0 = arith.constant 0 : i32
    %c0_i32_1 = arith.constant 0 : i32
    return %c0_i32, %c0_i32_0 : i32, i32
  }
  func.func @transform_2(%arg0: i32, %arg1: i32) -> (i32, i32) {
    %c0_i32 = arith.constant 0 : i32
    %c0_i32_0 = arith.constant 0 : i32
    %c0_i32_1 = arith.constant 0 : i32
    return %c0_i32, %c0_i32_0 : i32, i32
  }
  func.func @transform_3(%arg0: i32, %arg1: i32) -> (i32, i32, i32) {
    %c0_i32 = arith.constant 0 : i32
    %c0_i32_0 = arith.constant 0 : i32
    return %arg0, %c0_i32, %arg1 : i32, i32, i32
  }
}

</mosaic_0001>

<bundles_post_ra>
// kernel: tpu_custom_call.1
= control target key start
LH: loop header
LB: loop body
LE: loop exit
PB: predicated region body
PF: predicated region fallthrough
CT: control target
= control target key end

     0   :  { %8 = vsyncpa [#allocation3], 0  ;;  %s1719_s0 = inlined_call_operand.hbm [shape: f32[1,384,128], index: 0, kind: input, shape index: {}]   ;;  %s1720_s1 = inlined_call_operand.hbm [shape: f32[320,384], index: 1, kind: input, shape index: {}]   ;;  %s1721_s2 = inlined_call_operand.vmem [shape: f32[320,1], index: 2, kind: input, shape index: {}]   ;;  %s1722_s3 = inlined_call_operand.hbm [shape: f32[1,320,128], index: 3, kind: output, shape index: {}]  }
   0x1   :  { %9 = vsyncpa [#allocation6], 0 }
   0x2   :  { %10 = vsyncpa [#allocation4], 0  ;;  %s1382_s12 = smov [#allocation2]   ;;  %s1310_s16 = scalar_lea.hbm %s1719_s0, 6144 }
   0x3   :  { %s16_s13 = sshll.u32 %s1382_s12, 4  ;;  %p1311_p0 = scmp.ne.s32.totalorder %s1719_s0, %s1310_s16  ;;  %s17_s13 = int_to_ptr.vmem [resolvable:$true] %s16_s13 }
   0x4   :  { %p1314_p1 = scmp.lt.u32.totalorder %s1310_s16, %s1719_s0 }
   0x6   :  { %p1316_p2 = pnand %p1314_p1, %p1311_p0 }
   0x8   :  { %1319 = shalt.err (!%p1316_p2)
}
   0x9   :  { %s1320_s21 = scalar_lea.vmem %s17_s13, 6144  ;;  %p1325_p4 = scmp.lt.s32.totalorder %s17_s13, %s17_s13 }
   0xa   :  { %p1321_p3 = scmp.ne.s32.totalorder %s17_s13, %s1320_s21  ;;  %p1326_p5 = scmp.lt.s32.totalorder %s1320_s21, %s1320_s21 }
   0xc   :  { %p1327_p6 = por %p1326_p5, %p1325_p4 }
   0xe   :  { %p1328_p7 = pnand %p1327_p6, %p1321_p3 }
  0x10   :  { %1331 = shalt.err (!%p1328_p7)
}
  0x11   :  { %s1383_s22 = smov 128   ;;  %s1384_s23 = smov 8  }
  0x12   :  { %22 = dma.hbm_to_vmem [thread:$0]  %s1719_s0, 6144, %s17_s13, [#allocation3], %s1383_s22, %s1383_s22, %s1384_s23  }
  0x13   :  { %s1385_s26 = smov [#allocation5]   ;;  %s1332_s30 = scalar_lea.hbm %s1720_s1, 15360 }
  0x14   :  { %s28_s27 = sshll.u32 %s1385_s26, 4  ;;  %p1333_p8 = scmp.ne.s32.totalorder %s1720_s1, %s1332_s30  ;;  %s29_s27 = int_to_ptr.vmem [resolvable:$true] %s28_s27 }
  0x15   :  { %p1336_p9 = scmp.lt.u32.totalorder %s1332_s30, %s1720_s1 }
  0x17   :  { %p1338_p10 = pnand %p1336_p9, %p1333_p8 }
  0x19   :  { %1341 = shalt.err (!%p1338_p10)
}
  0x1a   :  { %s1342_s8 = scalar_lea.vmem %s29_s27, 15360  ;;  %p1347_p12 = scmp.lt.s32.totalorder %s29_s27, %s29_s27 }
  0x1b   :  { %p1343_p11 = scmp.ne.s32.totalorder %s29_s27, %s1342_s8  ;;  %p1348_p13 = scmp.lt.s32.totalorder %s1342_s8, %s1342_s8 }
  0x1d   :  { %p1349_p0 = por %p1348_p13, %p1347_p12 }
  0x1f   :  { %p1350_p1 = pnand %p1349_p0, %p1343_p11 }
  0x21   :  { %1353 = shalt.err (!%p1350_p1)
}
  0x22   :  { %s1386_s0 = smov 384   ;;  %s1387_s9 = smov 24  }
  0x23   :  { %34 = dma.hbm_to_vmem [thread:$0]  %s1720_s1, 15360, %s29_s27, [#allocation6], %s1386_s0, %s1386_s0, %s1387_s9  }
  0x24   :  { %1376 = dma.done.wait [#allocation3], 6144  }
  0x25   :  { %1377 = vsyncadd [#allocation3], 4294961152 }
  0x26   :  { %1378 = dma.done.wait [#allocation6], 15360  }
  0x27   :  { %1379 = vsyncadd [#allocation6], 4294951936  ;;  %v1388_v0 = vmov 0.0|0.0   ;;  %v1389_v1 = vmov 0   ;;  %v43_v2 = vld [vmem:[#allocation2] sm:$0xff]  ;;  %v44_v3 = vld [vmem:[#allocation2 + $0x8] sm:$0xff] }
  0x28   :  { %1187 = vmatprep.subr.bf16.mxu0 %v1388_v0  ;;  %1267 = vmatprep.subr.bf16.mxu1 %v1388_v0  ;;  %v45_v4 = vld [vmem:[#allocation2 + $0x10] sm:$0xff]  ;;  %v1188_v5 = vpack.c.bf16 %v44_v3, %v43_v2  ;;  %v46_v6 = vld [vmem:[#allocation2 + $0x18] sm:$0xff]  ;;  %v47_v8 = vld [vmem:[#allocation2 + $0x20] sm:$0xff] }
  0x29   :  { %1308 = vset.pattern.permute.xlu0 %v1389_v1  ;;  %1309 = vset.pattern.permute.xlu1 %v1389_v1  ;;  %v1191_v7 = vpack.c.bf16 %v46_v6, %v45_v4  ;;  %v48_v9 = vld [vmem:[#allocation2 + $0x28] sm:$0xff]  ;;  %v49_v11 = vld [vmem:[#allocation2 + $0x30] sm:$0xff]  ;;  %v50_v12 = vld [vmem:[#allocation2 + $0x38] sm:$0xff] }
  0x2a   :  { %1189 = vmatpush1.bf16.msra.mxu0 %v1188_v5  ;;  %1283 = vmatpush1.bf16.msra.mxu1 %v1188_v5  ;;  %v1194_v10 = vpack.c.bf16 %v48_v9, %v47_v8  ;;  %v92_v13 = vld [vmem:[#allocation5 + $0x8] sm:$0xff]  ;;  %v1197_v14 = vpack.c.bf16 %v50_v12, %v49_v11  ;;  %v182_v15 = vld [vmem:[#allocation5 + $0x2d8] sm:$0xff]  ;;  %v51_v16 = vld [vmem:[#allocation2 + $0x40] sm:$0xff] }
  0x2b   :  { %1190 = vmatprep.subr.bf16.mxu0 %v1388_v0  ;;  %1268 = vmatprep.subr.bf16.mxu1 %v1388_v0  ;;  %v52_v17 = vld [vmem:[#allocation2 + $0x48] sm:$0xff]  ;;  %v53_v19 = vld [vmem:[#allocation2 + $0x50] sm:$0xff]  ;;  %v54_v20 = vld [vmem:[#allocation2 + $0x58] sm:$0xff] }
  0x2c   :  { %515 = vmatprep.mubr.f32.mxu0 %v92_v13  ;;  %665 = vmatprep.mubr.f32.mxu1 %v182_v15  ;;  %v1200_v18 = vpack.c.bf16 %v52_v17, %v51_v16  ;;  %v1203_v21 = vpack.c.bf16 %v54_v20, %v53_v19  ;;  %v55_v22 = vld [vmem:[#allocation2 + $0x60] sm:$0xff]  ;;  %v56_v23 = vld [vmem:[#allocation2 + $0x68] sm:$0xff]  ;;  %v57_v26 = vld [vmem:[#allocation2 + $0x70] sm:$0xff] }
  0x2d   :  { %v1206_v24 = vpack.c.bf16 %v56_v23, %v55_v22  ;;  %v211_v25 = vld [vmem:[%s1721_s2] sm:$0xff]  ;;  %v58_v27 = vld [vmem:[#allocation2 + $0x78] sm:$0xff]  ;;  %v213_v28 = vld [vmem:[%s1721_s2 + $0x10] sm:$0xff] }
  0x2e   :  { %1192 = vmatpush1.bf16.msra.mxu0 %v1191_v7  ;;  %1284 = vmatpush1.bf16.msra.mxu1 %v1191_v7  ;;  %v212_v29 = vld [vmem:[%s1721_s2 + $0x8] sm:$0xff]  ;;  %v1209_v30 = vpack.c.bf16 %v58_v27, %v57_v26  ;;  %v59_v31 = vld [vmem:[#allocation2 + $0x80] sm:$0xff]  ;;  %v214_v33 = vld [vmem:[%s1721_s2 + $0x18] sm:$0xff] }
  0x2f   :  { %1193 = vmatprep.subr.bf16.mxu0 %v1388_v0  ;;  %1269 = vmatprep.subr.bf16.mxu1 %v1388_v0  ;;  %v60_v32 = vld [vmem:[#allocation2 + $0x88] sm:$0xff]  ;;  %v215_v34 = vld [vmem:[%s1721_s2 + $0x20] sm:$0xff]  ;;  %v61_v37 = vld [vmem:[#allocation2 + $0x90] sm:$0xff] }
  0x30   :  { %253 = vperm.xlu0 %1308, %v211_v25   ;;  %263 = vperm.xlu1 %1309, %v213_v28   ;;  %v1212_v35 = vpack.c.bf16 %v60_v32, %v59_v31  ;;  %v216_v36 = vld [vmem:[%s1721_s2 + $0x28] sm:$0xff]  ;;  %v62_v38 = vld [vmem:[#allocation2 + $0x98] sm:$0xff]  ;;  %v217_v39 = vld [vmem:[%s1721_s2 + $0x30] sm:$0xff] }
  0x31   :  { %v1215_v40 = vpack.c.bf16 %v62_v38, %v61_v37  ;;  %v218_v41 = vld [vmem:[%s1721_s2 + $0x38] sm:$0xff]  ;;  %v63_v42 = vld [vmem:[#allocation2 + $0xa0] sm:$0xff]  ;;  %v64_v43 = vld [vmem:[#allocation2 + $0xa8] sm:$0xff] }
  0x32   :  { %1195 = vmatpush1.bf16.msra.mxu0 %v1194_v10  ;;  %1285 = vmatpush1.bf16.msra.mxu1 %v1194_v10  ;;  %v219_v44 = vld [vmem:[%s1721_s2 + $0x40] sm:$0xff]  ;;  %v1218_v45 = vpack.c.bf16 %v64_v43, %v63_v42  ;;  %v220_v46 = vld [vmem:[%s1721_s2 + $0x48] sm:$0xff]  ;;  %v65_v47 = vld [vmem:[#allocation2 + $0xb0] sm:$0xff] }
  0x33   :  { %1196 = vmatprep.subr.bf16.mxu0 %v1388_v0  ;;  %1270 = vmatprep.subr.bf16.mxu1 %v1388_v0  ;;  %v66_v48 = vld [vmem:[#allocation2 + $0xb8] sm:$0xff]  ;;  %v221_v49 = vld [vmem:[%s1721_s2 + $0x50] sm:$0xff]  ;;  %v67_v52 = vld [vmem:[#allocation2 + $0xc0] sm:$0xff] }
  0x34   :  { %258 = vperm.xlu0 %1308, %v212_v29   ;;  %268 = vperm.xlu1 %1309, %v214_v33   ;;  %v1221_v50 = vpack.c.bf16 %v66_v48, %v65_v47  ;;  %v222_v51 = vld [vmem:[%s1721_s2 + $0x58] sm:$0xff]  ;;  %v68_v53 = vld [vmem:[#allocation2 + $0xc8] sm:$0xff]  ;;  %v223_v54 = vld [vmem:[%s1721_s2 + $0x60] sm:$0xff] }
  0x35   :  { %v1224_v55 = vpack.c.bf16 %v68_v53, %v67_v52  ;;  %v224_v56 = vld [vmem:[%s1721_s2 + $0x68] sm:$0xff]  ;;  %v69_v57 = vld [vmem:[#allocation2 + $0xd0] sm:$0xff]  ;;  %v70_v58 = vld [vmem:[#allocation2 + $0xd8] sm:$0xff] }
  0x36   :  { %1198 = vmatpush1.bf16.msra.mxu0 %v1197_v14  ;;  %1286 = vmatpush1.bf16.msra.mxu1 %v1197_v14  ;;  %v225_v59 = vld [vmem:[%s1721_s2 + $0x70] sm:$0xff]  ;;  %v1227_v60 = vpack.c.bf16 %v70_v58, %v69_v57  ;;  %v226_v61 = vld [vmem:[%s1721_s2 + $0x78] sm:$0xff]  ;;  %v71_v62 = vld [vmem:[#allocation2 + $0xe0] sm:$0xff] }
  0x37   :  { %1199 = vmatprep.subr.bf16.mxu0 %v1388_v0  ;;  %1271 = vmatprep.subr.bf16.mxu1 %v1388_v0  ;;  %v72_v63 = vld [vmem:[#allocation2 + $0xe8] sm:$0xff]  ;;  %v227_v1 = vld [vmem:[%s1721_s2 + $0x80] sm:$0xff]  ;;  %v73_v4 = vld [vmem:[#allocation2 + $0xf0] sm:$0xff] }
  0x38   :  { %273 = vperm.xlu0 %1308, %v215_v34   ;;  %278 = vperm.xlu1 %1309, %v216_v36   ;;  %v1230_v2 = vpack.c.bf16 %v72_v63, %v71_v62  ;;  %v228_v3 = vld [vmem:[%s1721_s2 + $0x88] sm:$0xff]  ;;  %v74_v5 = vld [vmem:[#allocation2 + $0xf8] sm:$0xff]  ;;  %v75_v6 = vld [vmem:[#allocation2 + $0x100] sm:$0xff] }
  0x39   :  { %v76_v7 = vld [vmem:[#allocation2 + $0x108] sm:$0xff]  ;;  %v229_v8 = vld [vmem:[%s1721_s2 + $0x90] sm:$0xff]  ;;  %v1233_v9 = vpack.c.bf16 %v74_v5, %v73_v4  ;;  %v230_v10 = vld [vmem:[%s1721_s2 + $0x98] sm:$0xff] }
  0x3a   :  { %1201 = vmatpush1.bf16.msra.mxu0 %v1200_v18  ;;  %1287 = vmatpush1.bf16.msra.mxu1 %v1200_v18  ;;  %v1235_v11 = vpack.c.bf16 %v76_v7, %v75_v6  ;;  %v77_v12 = vld [vmem:[#allocation2 + $0x110] sm:$0xff]  ;;  %v78_v13 = vld [vmem:[#allocation2 + $0x118] sm:$0xff]  ;;  %v231_v14 = vld [vmem:[%s1721_s2 + $0xa0] sm:$0xff] }
  0x3b   :  { %1202 = vmatprep.subr.bf16.mxu0 %v1388_v0  ;;  %1272 = vmatprep.subr.bf16.mxu1 %v1388_v0  ;;  %v91_v15 = vld [vmem:[#allocation5] sm:$0xff]  ;;  %v181_v16 = vld [vmem:[#allocation5 + $0x2d0] sm:$0xff]  ;;  %v1239_v18 = vpack.c.bf16 %v78_v13, %v77_v12  ;;  %v94_v23 = vld [vmem:[#allocation5 + $0x18] sm:$0xff] }
  0x3c   :  { %283 = vperm.xlu0 %1308, %v217_v39   ;;  %288 = vperm.xlu1 %1309, %v218_v41   ;;  %v95_v17 = vld [vmem:[#allocation5 + $0x20] sm:$0xff]  ;;  %v185_v19 = vld [vmem:[#allocation5 + $0x2f0] sm:$0xff]  ;;  %v98_v25 = vld [vmem:[#allocation5 + $0x38] sm:$0xff] }
  0x3d   :  { %v79_v20 = vld [vmem:[#allocation2 + $0x120] sm:$0xff]  ;;  %v233_v22 = vld [vmem:[%s1721_s2 + $0xb0] sm:$0xff]  ;;  %v188_v27 = vld [vmem:[#allocation5 + $0x308] sm:$0xff] }
  0x3e   :  { %1204 = vmatpush1.bf16.msra.mxu0 %v1203_v21  ;;  %1288 = vmatpush1.bf16.msra.mxu1 %v1203_v21  ;;  %v80_v21 = vld [vmem:[#allocation2 + $0x128] sm:$0xff]  ;;  %v81_v28 = vld [vmem:[#allocation2 + $0x130] sm:$0xff]  ;;  %v82_v29 = vld [vmem:[#allocation2 + $0x138] sm:$0xff] }
  0x3f   :  { %1205 = vmatprep.subr.bf16.mxu0 %v1388_v0  ;;  %1273 = vmatprep.subr.bf16.mxu1 %v1388_v0  ;;  %v1243_v26 = vpack.c.bf16 %v80_v21, %v79_v20  ;;  %v235_v31 = vld [vmem:[%s1721_s2 + $0xc0] sm:$0xff]  ;;  %v97_v32 = vld [vmem:[#allocation5 + $0x30] sm:$0xff]  ;;  %v1247_v36 = vpack.c.bf16 %v82_v29, %v81_v28  ;;  %v84_v38 = vld [vmem:[#allocation2 + $0x148] sm:$0xff] }
  0x40   :  { %293 = vperm.xlu0 %1308, %v219_v44   ;;  %298 = vperm.xlu1 %1309, %v220_v46   ;;  %v187_v33 = vld [vmem:[#allocation5 + $0x300] sm:$0xff]  ;;  %v101_v34 = vld [vmem:[#allocation5 + $0x50] sm:$0xff]  ;;  %v236_v39 = vld [vmem:[%s1721_s2 + $0xc8] sm:$0xff] }
  0x41   :  { %v83_v37 = vld [vmem:[#allocation2 + $0x140] sm:$0xff]  ;;  %v190_v41 = vld [vmem:[#allocation5 + $0x318] sm:$0xff]  ;;  %v104_v42 = vld [vmem:[#allocation5 + $0x68] sm:$0xff] }
  0x42   :  { %1207 = vmatpush1.bf16.msra.mxu0 %v1206_v24  ;;  %1289 = vmatpush1.bf16.msra.mxu1 %v1206_v24  ;;  %v184_v24 = vld [vmem:[#allocation5 + $0x2e8] sm:$0xff]  ;;  %v194_v43 = vld [vmem:[#allocation5 + $0x338] sm:$0xff]  ;;  %v1251_v44 = vpack.c.bf16 %v84_v38, %v83_v37  ;;  %v85_v46 = vld [vmem:[#allocation2 + $0x150] sm:$0xff] }
  0x43   :  { %1208 = vmatprep.subr.bf16.mxu0 %v1388_v0  ;;  %1274 = vmatprep.subr.bf16.mxu1 %v1388_v0  ;;  %v86_v47 = vld [vmem:[#allocation2 + $0x158] sm:$0xff]  ;;  %v197_v52 = vld [vmem:[#allocation5 + $0x350] sm:$0xff]  ;;  %v240_v57 = vld [vmem:[%s1721_s2 + $0xe8] sm:$0xff] }
  0x44   :  { %303 = vperm.xlu0 %1308, %v221_v49   ;;  %308 = vperm.xlu1 %1309, %v222_v51   ;;  %v238_v48 = vld [vmem:[%s1721_s2 + $0xd8] sm:$0xff]  ;;  %v103_v49 = vld [vmem:[#allocation5 + $0x60] sm:$0xff]  ;;  %v1255_v53 = vpack.c.bf16 %v86_v47, %v85_v46  ;;  %v241_v63 = vld [vmem:[%s1721_s2 + $0xf0] sm:$0xff] }
  0x45   :  { %v107_v51 = vld [vmem:[#allocation5 + $0x80] sm:$0xff]  ;;  %v106_v58 = vld [vmem:[#allocation5 + $0x78] sm:$0xff]  ;;  %v109_v4 = vld [vmem:[#allocation5 + $0x90] sm:$0xff] }
  0x46   :  { %1210 = vmatpush1.bf16.msra.mxu0 %v1209_v30  ;;  %1290 = vmatpush1.bf16.msra.mxu1 %v1209_v30  ;;  %v234_v30 = vld [vmem:[%s1721_s2 + $0xb8] sm:$0xff]  ;;  %v199_v5 = vld [vmem:[#allocation5 + $0x360] sm:$0xff]  ;;  %v113_v6 = vld [vmem:[#allocation5 + $0xb0] sm:$0xff] }
  0x47   :  { %1211 = vmatprep.subr.bf16.mxu0 %v1388_v0  ;;  %1275 = vmatprep.subr.bf16.mxu1 %v1388_v0  ;;  %v203_v7 = vld [vmem:[#allocation5 + $0x380] sm:$0xff]  ;;  %v202_v12 = vld [vmem:[#allocation5 + $0x378] sm:$0xff]  ;;  %v116_v13 = vld [vmem:[#allocation5 + $0xc8] sm:$0xff] }
  0x48   :  { %313 = vperm.xlu0 %1308, %v223_v54   ;;  %318 = vperm.xlu1 %1309, %v224_v56   ;;  %v239_v54 = vld [vmem:[%s1721_s2 + $0xe0] sm:$0xff]  ;;  %v88_v56 = vld [vmem:[#allocation2 + $0x168] sm:$0xff]  ;;  %v209_v20 = vld [vmem:[#allocation5 + $0x3b0] sm:$0xff] }
  0x49   :  { %v247_v21 = vld [vmem:[%s1721_s2 + $0x120] sm:$0xff]  ;;  %v121_v28 = vld [vmem:[#allocation5 + $0xf0] sm:$0xff]  ;;  %v96_v29 = vld [vmem:[#allocation5 + $0x28] sm:$0xff] }
  0x4a   :  { %1213 = vmatpush1.bf16.msra.mxu0 %v1212_v35  ;;  %1291 = vmatpush1.bf16.msra.mxu1 %v1212_v35  ;;  %v191_v35 = vld [vmem:[#allocation5 + $0x320] sm:$0xff]  ;;  %v108_v37 = vld [vmem:[#allocation5 + $0x88] sm:$0xff]  ;;  %v137_v46 = vld [vmem:[#allocation5 + $0x170] sm:$0xff] }
  0x4b   :  { %1214 = vmatprep.subr.bf16.mxu0 %v1388_v0  ;;  %1276 = vmatprep.subr.bf16.mxu1 %v1388_v0  ;;  %v131_v38 = vld [vmem:[#allocation5 + $0x140] sm:$0xff] }
  0x4c   :  { %323 = vperm.xlu0 %1308, %v225_v59   ;;  %328 = vperm.xlu1 %1309, %v226_v61   ;;  %v196_v59 = vld [vmem:[#allocation5 + $0x348] sm:$0xff]  ;;  %v123_v47 = vld [vmem:[#allocation5 + $0x100] sm:$0xff] }
  0x4d   :  { %v200_v61 = vld [vmem:[#allocation5 + $0x368] sm:$0xff] }
  0x4e   :  { %1216 = vmatpush1.bf16.msra.mxu0 %v1215_v40  ;;  %1292 = vmatpush1.bf16.msra.mxu1 %v1215_v40  ;;  %v100_v40 = vld [vmem:[#allocation5 + $0x48] sm:$0xff] }
  0x4f   :  { %1217 = vmatprep.subr.bf16.mxu0 %v1388_v0  ;;  %1277 = vmatprep.subr.bf16.mxu1 %v1388_v0 }
  0x50   :  { %333 = vperm.xlu0 %1308, %v227_v1   ;;  %338 = vperm.xlu1 %1309, %v228_v3   ;;  %v89_v1 = vld [vmem:[#allocation2 + $0x170] sm:$0xff]  ;;  %v242_v3 = vld [vmem:[%s1721_s2 + $0xf8] sm:$0xff] }
  0x52   :  { %1219 = vmatpush1.bf16.msra.mxu0 %v1218_v45  ;;  %1293 = vmatpush1.bf16.msra.mxu1 %v1218_v45  ;;  %v237_v45 = vld [vmem:[%s1721_s2 + $0xd0] sm:$0xff] }
  0x53   :  { %1220 = vmatprep.subr.bf16.mxu0 %v1388_v0  ;;  %1278 = vmatprep.subr.bf16.mxu1 %v1388_v0 }
  0x54   :  { %343 = vperm.xlu0 %1308, %v229_v8   ;;  %348 = vperm.xlu1 %1309, %v230_v10   ;;  %v244_v10 = vld [vmem:[%s1721_s2 + $0x108] sm:$0xff] }
  0x56   :  { %1222 = vmatpush1.bf16.msra.mxu0 %v1221_v50  ;;  %1294 = vmatpush1.bf16.msra.mxu1 %v1221_v50  ;;  %v193_v50 = vld [vmem:[#allocation5 + $0x330] sm:$0xff] }
  0x57   :  { %1223 = vmatprep.subr.bf16.mxu0 %v1388_v0  ;;  %1279 = vmatprep.subr.bf16.mxu1 %v1388_v0 }
  0x58   :  { %353 = vperm.xlu0 %1308, %v231_v14   ;;  %v206_v14 = vld [vmem:[#allocation5 + $0x398] sm:$0xff] }
  0x5a   :  { %1225 = vmatpush1.bf16.msra.mxu0 %v1224_v55  ;;  %1295 = vmatpush1.bf16.msra.mxu1 %v1224_v55  ;;  %v87_v55 = vld [vmem:[#allocation2 + $0x160] sm:$0xff] }
  0x5b   :  { %1226 = vmatprep.subr.bf16.mxu0 %v1388_v0  ;;  %1280 = vmatprep.subr.bf16.mxu1 %v1388_v0  ;;  %v1259_v62 = vpack.c.bf16 %v88_v56, %v87_v55  ;;  %v135_v55 = vld [vmem:[#allocation5 + $0x160] sm:$0xff]  ;;  %v142_v56 = vld [vmem:[#allocation5 + $0x198] sm:$0xff] }
  0x5c   :  { %363 = vperm.xlu0 %1308, %v233_v22   ;;  %v118_v22 = vld [vmem:[#allocation5 + $0xd8] sm:$0xff] }
  0x5e   :  { %1228 = vmatpush1.bf16.msra.mxu0 %v1227_v60  ;;  %1296 = vmatpush1.bf16.msra.mxu1 %v1227_v60  ;;  %v110_v60 = vld [vmem:[#allocation5 + $0x98] sm:$0xff] }
  0x5f   :  { %1229 = vmatprep.subr.bf16.mxu0 %v1388_v0  ;;  %1281 = vmatprep.subr.bf16.mxu1 %v1388_v0 }
  0x60   :  { %373 = vperm.xlu0 %1308, %v235_v31   ;;  %v99_v31 = vld [vmem:[#allocation5 + $0x40] sm:$0xff] }
  0x62   :  { %1231 = vmatpush1.bf16.msra.mxu0 %v1230_v2  ;;  %1297 = vmatpush1.bf16.msra.mxu1 %v1230_v2  ;;  %v90_v2 = vld [vmem:[#allocation2 + $0x178] sm:$0xff] }
  0x63   :  { %1232 = vmatprep.subr.bf16.mxu0 %v1388_v0  ;;  %1282 = vmatprep.subr.bf16.mxu1 %v1388_v0  ;;  %v232_v0 = vld [vmem:[%s1721_s2 + $0xa8] sm:$0xff]  ;;  %v1263_v8 = vpack.c.bf16 %v90_v2, %v89_v1  ;;  %v150_v2 = vld [vmem:[#allocation5 + $0x1d8] sm:$0xff] }
  0x64   :  { %358 = vperm.xlu1 %1309, %v232_v0   ;;  %383 = vperm.xlu0 %1308, %v237_v45   ;;  %v248_v0 = vld [vmem:[%s1721_s2 + $0x128] sm:$0xff] }
  0x65   :  { %v120_v45 = vld [vmem:[#allocation5 + $0xe8] sm:$0xff] }
  0x66   :  { %1234 = vmatpush1.bf16.msra.mxu0 %v1233_v9  ;;  %1298 = vmatpush1.bf16.msra.mxu1 %v1233_v9  ;;  %v243_v9 = vld [vmem:[%s1721_s2 + $0x100] sm:$0xff]  ;;  %v148_v1 = vld [vmem:[#allocation5 + $0x1c8] sm:$0xff] }
  0x67   :  { %1236 = vmatprep.subr.bf16.mxu1 %v1235_v11 }
  0x68   :  { %368 = vperm.xlu1 %1309, %v234_v30   ;;  %393 = vperm.xlu0 %1308, %v239_v54   ;;  %v125_v30 = vld [vmem:[#allocation5 + $0x110] sm:$0xff]  ;;  %v143_v54 = vld [vmem:[#allocation5 + $0x1a0] sm:$0xff] }
  0x69   :  { %516 = vmatmul.mubr.f32.vlgmr.msra.gmra.mrb[0].mxu0 %v91_v15  ;;  %666 = vmatmul.mubr.f32.vlgmr.msra.gmra.mrb[0].mxu1 %v181_v16  ;;  %v245_v15 = vld [vmem:[%s1721_s2 + $0x110] sm:$0xff]  ;;  %v246_v16 = vld [vmem:[%s1721_s2 + $0x118] sm:$0xff] }
  0x6a   :  { %1238 = vmatpush3.bf16.msra.mxu1 %v1235_v11  ;;  %520 = vmatprep.mubr.f32.mxu0 %v95_v17  ;;  %v112_v11 = vld [vmem:[#allocation5 + $0xa8] sm:$0xff]  ;;  %v115_v17 = vld [vmem:[#allocation5 + $0xc0] sm:$0xff] }
  0x6b   :  { %670 = vmatprep.mubr.f32.mxu1 %v185_v19  ;;  %1240 = vmatprep.subr.bf16.mxu1 %v1239_v18  ;;  %v119_v19 = vld [vmem:[#allocation5 + $0xe0] sm:$0xff] }
  0x6c   :  { %378 = vperm.xlu1 %1309, %v236_v39   ;;  %403 = vperm.xlu0 %1308, %v241_v63   ;;  %v111_v39 = vld [vmem:[#allocation5 + $0xa0] sm:$0xff] }
  0x6d   :  { %521 = vmatmul.mubr.f32.gmra.mrb[2].mxu0 %v94_v23  ;;  %671 = vmatmul.mubr.f32.gmra.mrb[2].mxu1 %v184_v24  ;;  %v208_v23 = vld [vmem:[#allocation5 + $0x3a8] sm:$0xff]  ;;  %v122_v24 = vld [vmem:[#allocation5 + $0xf8] sm:$0xff]  ;;  %v147_v63 = vld [vmem:[#allocation5 + $0x1c0] sm:$0xff] }
  0x6e   :  { %1242 = vmatpush3.bf16.msra.mxu1 %v1239_v18  ;;  %525 = vmatprep.mubr.f32.mxu0 %v98_v25  ;;  %v205_v18 = vld [vmem:[#allocation5 + $0x390] sm:$0xff] }
  0x6f   :  { %675 = vmatprep.mubr.f32.mxu1 %v188_v27  ;;  %1244 = vmatprep.subr.bf16.mxu1 %v1243_v26  ;;  %v93_v25 = vld [vmem:[#allocation5 + $0x10] sm:$0xff]  ;;  %v250_v27 = vld [vmem:[%s1721_s2 + $0x138] sm:$0xff] }
  0x70   :  { %388 = vperm.xlu1 %1309, %v238_v48   ;;  %413 = vperm.xlu0 %1308, %v243_v9   ;;  %v136_v48 = vld [vmem:[#allocation5 + $0x168] sm:$0xff]  ;;  %v154_v9 = vld [vmem:[#allocation5 + $0x1f8] sm:$0xff] }
  0x71   :  { %526 = vmatmul.mubr.f32.gmra.mrb[4].mxu0 %v97_v32  ;;  %676 = vmatmul.mubr.f32.gmra.mrb[4].mxu1 %v187_v33  ;;  %v124_v32 = vld [vmem:[#allocation5 + $0x108] sm:$0xff]  ;;  %v102_v33 = vld [vmem:[#allocation5 + $0x58] sm:$0xff] }
  0x72   :  { %530 = vmatprep.mubr.f32.mxu0 %v101_v34  ;;  %680 = vmatprep.mubr.f32.mxu1 %v191_v35  ;;  %v128_v34 = vld [vmem:[#allocation5 + $0x128] sm:$0xff]  ;;  %v105_v35 = vld [vmem:[#allocation5 + $0x70] sm:$0xff] }
  0x73   :  { %1246 = vmatpush3.bf16.msra.mxu1 %v1243_v26  ;;  %v249_v26 = vld [vmem:[%s1721_s2 + $0x130] sm:$0xff]  ;;  %s1390_s2 = smov [#allocation7]  }
  0x74   :  { %1248 = vmatprep.subr.bf16.mxu1 %v1247_v36  ;;  %398 = vperm.xlu1 %1309, %v240_v57   ;;  %v138_v57 = vld [vmem:[#allocation5 + $0x178] sm:$0xff]  ;;  %s1026_s11 = sshll.u32 %s1390_s2, 4  ;;  %s1027_s11 = int_to_ptr.vmem [resolvable:$true] %s1026_s11 }
  0x75   :  { %531 = vmatmul.mubr.f32.gmra.mrb[6].mxu0 %v100_v40  ;;  %681 = vmatmul.mubr.f32.gmra.mrb[6].mxu1 %v190_v41  ;;  %v130_v40 = vld [vmem:[#allocation5 + $0x138] sm:$0xff]  ;;  %s1354_s1 = scalar_lea.vmem %s1027_s11, 5120  ;;  %p1359_p3 = scmp.lt.s32.totalorder %s1027_s11, %s1027_s11 }
  0x76   :  { %535 = vmatprep.mubr.f32.mxu0 %v104_v42  ;;  %685 = vmatprep.mubr.f32.mxu1 %v194_v43  ;;  %v114_v41 = vld [vmem:[#allocation5 + $0xb8] sm:$0xff]  ;;  %v117_v43 = vld [vmem:[#allocation5 + $0xd0] sm:$0xff]  ;;  %p1355_p2 = scmp.ne.s32.totalorder %s1027_s11, %s1354_s1  ;;  %p1360_p4 = scmp.lt.s32.totalorder %s1354_s1, %s1354_s1 }
  0x77   :  { %1250 = vmatpush3.bf16.msra.mxu1 %v1247_v36  ;;  %423 = vperm.xlu0 %1308, %v245_v15   ;;  %v127_v36 = vld [vmem:[#allocation5 + $0x120] sm:$0xff]  ;;  %v134_v42 = vld [vmem:[#allocation5 + $0x158] sm:$0xff]  ;;  %v161_v15 = vld [vmem:[#allocation5 + $0x230] sm:$0xff] }
  0x78   :  { %1252 = vmatprep.subr.bf16.mxu1 %v1251_v44  ;;  %408 = vperm.xlu1 %1309, %v242_v3   ;;  %v152_v3 = vld [vmem:[#allocation5 + $0x1e8] sm:$0xff]  ;;  %p1361_p5 = por %p1360_p4, %p1359_p3 }
  0x79   :  { %536 = vmatmul.mubr.f32.gmra.mrb[8].mxu0 %v103_v49  ;;  %686 = vmatmul.mubr.f32.gmra.mrb[8].mxu1 %v193_v50  ;;  %v126_v49 = vld [vmem:[#allocation5 + $0x118] sm:$0xff]  ;;  %v140_v50 = vld [vmem:[#allocation5 + $0x188] sm:$0xff] }
  0x7a   :  { %540 = vmatprep.mubr.f32.mxu0 %v107_v51  ;;  %690 = vmatprep.mubr.f32.mxu1 %v197_v52  ;;  %v129_v51 = vld [vmem:[#allocation5 + $0x130] sm:$0xff]  ;;  %v139_v52 = vld [vmem:[#allocation5 + $0x180] sm:$0xff]  ;;  %p1362_p6 = pnand %p1361_p5, %p1355_p2 }
  0x7b   :  { %1254 = vmatpush3.bf16.msra.mxu1 %v1251_v44  ;;  %433 = vperm.xlu0 %1308, %v247_v21   ;;  %v133_v44 = vld [vmem:[#allocation5 + $0x150] sm:$0xff]  ;;  %v163_v21 = vld [vmem:[#allocation5 + $0x240] sm:$0xff] }
  0x7c   :  { %1256 = vmatprep.subr.bf16.mxu1 %v1255_v53  ;;  %418 = vperm.xlu1 %1309, %v244_v10   ;;  %v162_v10 = vld [vmem:[#allocation5 + $0x238] sm:$0xff] }
  0x7d   :  { %541 = vmatmul.mubr.f32.gmra.mrb[10].mxu0 %v106_v58  ;;  %691 = vmatmul.mubr.f32.gmra.mrb[10].mxu1 %v196_v59  ;;  %v146_v58 = vld [vmem:[#allocation5 + $0x1b8] sm:$0xff]  ;;  %v141_v59 = vld [vmem:[#allocation5 + $0x190] sm:$0xff] }
  0x7e   :  { %545 = vmatprep.mubr.f32.mxu0 %v110_v60  ;;  %695 = vmatprep.mubr.f32.mxu1 %v200_v61  ;;  %v145_v60 = vld [vmem:[#allocation5 + $0x1b0] sm:$0xff]  ;;  %v144_v61 = vld [vmem:[#allocation5 + $0x1a8] sm:$0xff] }
  0x7f   :  { %1258 = vmatpush3.bf16.msra.mxu1 %v1255_v53  ;;  %443 = vperm.xlu0 %1308, %v249_v26   ;;  %v132_v53 = vld [vmem:[#allocation5 + $0x148] sm:$0xff]  ;;  %v170_v26 = vld [vmem:[#allocation5 + $0x278] sm:$0xff] }
  0x80   :  { %1260 = vmatprep.subr.bf16.mxu1 %v1259_v62  ;;  %428 = vperm.xlu1 %1309, %v246_v16   ;;  %v171_v16 = vld [vmem:[#allocation5 + $0x280] sm:$0xff] }
  0x81   :  { %546 = vmatmul.mubr.f32.gmra.mrb[12].mxu0 %v109_v4  ;;  %696 = vmatmul.mubr.f32.gmra.mrb[12].mxu1 %v199_v5  ;;  %v153_v4 = vld [vmem:[#allocation5 + $0x1f0] sm:$0xff]  ;;  %v151_v5 = vld [vmem:[#allocation5 + $0x1e0] sm:$0xff] }
  0x82   :  { %550 = vmatprep.mubr.f32.mxu0 %v113_v6  ;;  %700 = vmatprep.mubr.f32.mxu1 %v203_v7  ;;  %v156_v6 = vld [vmem:[#allocation5 + $0x208] sm:$0xff]  ;;  %v155_v7 = vld [vmem:[#allocation5 + $0x200] sm:$0xff] }
  0x83   :  { %1262 = vmatpush3.bf16.msra.mxu1 %v1259_v62  ;;  %v149_v62 = vld [vmem:[#allocation5 + $0x1d0] sm:$0xff] }
  0x84   :  { %1264 = vmatprep.subr.bf16.mxu1 %v1263_v8  ;;  %438 = vperm.xlu1 %1309, %v248_v0   ;;  %v180_v0 = vld [vmem:[#allocation5 + $0x2c8] sm:$0xff] }
  0x85   :  { %551 = vmatmul.mubr.f32.gmra.mrb[14].mxu0 %v112_v11  ;;  %701 = vmatmul.mubr.f32.gmra.mrb[14].mxu1 %v202_v12  ;;  %v158_v11 = vld [vmem:[#allocation5 + $0x218] sm:$0xff]  ;;  %v165_v12 = vld [vmem:[#allocation5 + $0x250] sm:$0xff] }
  0x86   :  { %555 = vmatprep.mubr.f32.mxu0 %v116_v13  ;;  %705 = vmatprep.mubr.f32.mxu1 %v206_v14  ;;  %v157_v13 = vld [vmem:[#allocation5 + $0x210] sm:$0xff]  ;;  %v168_v14 = vld [vmem:[#allocation5 + $0x268] sm:$0xff] }
  0x87   :  { %1266 = vmatpush3.bf16.msra.mxu1 %v1263_v8  ;;  %v159_v8 = vld [vmem:[#allocation5 + $0x220] sm:$0xff] }
  0x88   :  { %448 = vperm.xlu1 %1309, %v250_v27   ;;  %v189_v27 = vld [vmem:[#allocation5 + $0x310] sm:$0xff] }
  0x89   :  { %556 = vmatmul.mubr.f32.gmra.mrb[16].mxu0 %v115_v17  ;;  %706 = vmatmul.mubr.f32.gmra.mrb[16].mxu1 %v205_v18  ;;  %v160_v17 = vld [vmem:[#allocation5 + $0x228] sm:$0xff]  ;;  %v174_v18 = vld [vmem:[#allocation5 + $0x298] sm:$0xff] }
  0x8a   :  { %560 = vmatprep.mubr.f32.mxu0 %v119_v19  ;;  %710 = vmatprep.mubr.f32.mxu1 %v209_v20  ;;  %v164_v19 = vld [vmem:[#allocation5 + $0x248] sm:$0xff]  ;;  %v177_v20 = vld [vmem:[#allocation5 + $0x2b0] sm:$0xff] }
  0x8d   :  { %561 = vmatmul.mubr.f32.gmra.mrb[18].mxu0 %v118_v22  ;;  %711 = vmatmul.mubr.f32.gmra.mrb[18].mxu1 %v208_v23  ;;  %v167_v22 = vld [vmem:[#allocation5 + $0x260] sm:$0xff] }
  0x8e   :  { %565 = vmatprep.mubr.f32.mxu0 %v122_v24  ;;  %1127 = vmatprep.mubr.f32.mxu1 %v93_v25  ;;  %v183_v23 = vld [vmem:[#allocation5 + $0x2e0] sm:$0xff]  ;;  %v166_v24 = vld [vmem:[#allocation5 + $0x258] sm:$0xff] }
  0x8f   :  { %v186_v25 = vld [vmem:[#allocation5 + $0x2f8] sm:$0xff] }
  0x91   :  { %566 = vmatmul.mubr.f32.gmra.mrb[20].mxu0 %v121_v28  ;;  %1128 = vmatmul.mubr.f32.vlgmr.msra.gmra.mrb[20].mxu1 %v96_v29  ;;  %v169_v28 = vld [vmem:[#allocation5 + $0x270] sm:$0xff]  ;;  %v192_v29 = vld [vmem:[#allocation5 + $0x328] sm:$0xff] }
  0x92   :  { %570 = vmatprep.mubr.f32.mxu0 %v125_v30  ;;  %1130 = vmatprep.mubr.f32.mxu1 %v99_v31  ;;  %v173_v30 = vld [vmem:[#allocation5 + $0x290] sm:$0xff]  ;;  %v195_v31 = vld [vmem:[#allocation5 + $0x340] sm:$0xff] }
  0x95   :  { %571 = vmatmul.mubr.f32.gmra.mrb[22].mxu0 %v124_v32  ;;  %1131 = vmatmul.mubr.f32.gmra.mrb[22].mxu1 %v102_v33  ;;  %v172_v32 = vld [vmem:[#allocation5 + $0x288] sm:$0xff]  ;;  %v198_v33 = vld [vmem:[#allocation5 + $0x358] sm:$0xff] }
  0x96   :  { %575 = vmatprep.mubr.f32.mxu0 %v128_v34  ;;  %1133 = vmatprep.mubr.f32.mxu1 %v105_v35  ;;  %v176_v34 = vld [vmem:[#allocation5 + $0x2a8] sm:$0xff]  ;;  %v201_v35 = vld [vmem:[#allocation5 + $0x370] sm:$0xff] }
  0x99   :  { %576 = vmatmul.mubr.f32.gmra.mrb[24].mxu0 %v127_v36  ;;  %1134 = vmatmul.mubr.f32.gmra.mrb[24].mxu1 %v108_v37  ;;  %v175_v36 = vld [vmem:[#allocation5 + $0x2a0] sm:$0xff]  ;;  %v204_v37 = vld [vmem:[#allocation5 + $0x388] sm:$0xff] }
  0x9a   :  { %580 = vmatprep.mubr.f32.mxu0 %v131_v38  ;;  %1136 = vmatprep.mubr.f32.mxu1 %v111_v39  ;;  %v179_v38 = vld [vmem:[#allocation5 + $0x2c0] sm:$0xff] }
  0x9b   :  { %v207_v39 = vld [vmem:[#allocation5 + $0x3a0] sm:$0xff] }
  0x9d   :  { %581 = vmatmul.mubr.f32.gmra.mrb[26].mxu0 %v130_v40  ;;  %1137 = vmatmul.mubr.f32.gmra.mrb[26].mxu1 %v114_v41  ;;  %v178_v40 = vld [vmem:[#allocation5 + $0x2b8] sm:$0xff] }
  0x9e   :  { %585 = vmatprep.mubr.f32.mxu0 %v134_v42  ;;  %1139 = vmatprep.mubr.f32.mxu1 %v117_v43  ;;  %v210_v41 = vld [vmem:[#allocation5 + $0x3b8] sm:$0xff] }
  0xa1   :  { %586 = vmatmul.mubr.f32.gmra.mrb[28].mxu0 %v133_v44  ;;  %1140 = vmatmul.mubr.f32.gmra.mrb[28].mxu1 %v120_v45 }
  0xa2   :  { %590 = vmatprep.mubr.f32.mxu0 %v137_v46  ;;  %1142 = vmatprep.mubr.f32.mxu1 %v123_v47 }
  0xa5   :  { %591 = vmatmul.mubr.f32.gmra.mrb[30].mxu0 %v136_v48  ;;  %1143 = vmatmul.mubr.f32.gmra.mrb[30].mxu1 %v126_v49 }
  0xa6   :  { %595 = vmatprep.mubr.f32.mxu0 %v140_v50  ;;  %1145 = vmatprep.mubr.f32.mxu1 %v129_v51 }
  0xa9   :  { %596 = vmatmul.mubr.f32.gmra.mrb[32].mxu0 %v139_v52  ;;  %1146 = vmatmul.mubr.f32.gmra.mrb[32].mxu1 %v132_v53 }
  0xaa   :  { %600 = vmatprep.mubr.f32.mxu0 %v143_v54  ;;  %1148 = vmatprep.mubr.f32.mxu1 %v135_v55 }
  0xad   :  { %601 = vmatmul.mubr.f32.gmra.mrb[34].mxu0 %v142_v56  ;;  %1149 = vmatmul.mubr.f32.gmra.mrb[34].mxu1 %v138_v57 }
  0xae   :  { %605 = vmatprep.mubr.f32.mxu0 %v146_v58  ;;  %1151 = vmatprep.mubr.f32.mxu1 %v141_v59 }
  0xaf   :  { %v254_v42 = vpop.permute.xlu0 %253  ;;  %v1590_v43 = vpop.permute.xlu1 %263 }
  0xb1   :  { %606 = vmatmul.mubr.f32.gmra.mrb[36].mxu0 %v145_v60  ;;  %1152 = vmatmul.mubr.f32.gmra.mrb[36].mxu1 %v144_v61 }
  0xb2   :  { %610 = vmatprep.mubr.f32.mxu0 %v149_v62  ;;  %1154 = vmatprep.mubr.f32.mxu1 %v147_v63 }
  0xb3   :  { %v259_v44 = vpop.permute.xlu0 %258  ;;  %v1592_v45 = vpop.permute.xlu1 %268 }
  0xb5   :  { %611 = vmatmul.mubr.f32.gmra.mrb[38].mxu0 %v148_v1  ;;  %1155 = vmatmul.mubr.f32.gmra.mrb[38].mxu1 %v150_v2 }
  0xb6   :  { %615 = vmatprep.mubr.f32.mxu0 %v152_v3  ;;  %1157 = vmatprep.mubr.f32.mxu1 %v153_v4 }
  0xb7   :  { %v1594_v46 = vpop.permute.xlu0 %273  ;;  %v1596_v47 = vpop.permute.xlu1 %278 }
  0xb9   :  { %616 = vmatmul.mubr.f32.gmra.mrb[40].mxu0 %v151_v5  ;;  %1158 = vmatmul.mubr.f32.gmra.mrb[40].mxu1 %v156_v6 }
  0xba   :  { %620 = vmatprep.mubr.f32.mxu0 %v155_v7  ;;  %1160 = vmatprep.mubr.f32.mxu1 %v159_v8 }
  0xbb   :  { %v1598_v48 = vpop.permute.xlu0 %283  ;;  %v1600_v49 = vpop.permute.xlu1 %288 }
  0xbd   :  { %621 = vmatmul.mubr.f32.gmra.mrb[42].mxu0 %v154_v9  ;;  %1161 = vmatmul.mubr.f32.gmra.mrb[42].mxu1 %v162_v10 }
  0xbe   :  { %625 = vmatprep.mubr.f32.mxu0 %v158_v11  ;;  %1163 = vmatprep.mubr.f32.mxu1 %v165_v12 }
  0xbf   :  { %v1606_v58 = vpop.permute.xlu0 %293  ;;  %v1608_v59 = vpop.permute.xlu1 %298 }
  0xc1   :  { %626 = vmatmul.mubr.f32.gmra.mrb[44].mxu0 %v157_v13  ;;  %1164 = vmatmul.mubr.f32.gmra.mrb[44].mxu1 %v168_v14 }
  0xc2   :  { %630 = vmatprep.mubr.f32.mxu0 %v161_v15  ;;  %1166 = vmatprep.mubr.f32.mxu1 %v171_v16 }
  0xc3   :  { %v1614_v5 = vpop.permute.xlu0 %303  ;;  %v1616_v6 = vpop.permute.xlu1 %308 }
  0xc5   :  { %631 = vmatmul.mubr.f32.gmra.mrb[46].mxu0 %v160_v17  ;;  %1167 = vmatmul.mubr.f32.gmra.mrb[46].mxu1 %v174_v18 }
  0xc6   :  { %635 = vmatprep.mubr.f32.mxu0 %v164_v19  ;;  %1169 = vmatprep.mubr.f32.mxu1 %v177_v20 }
  0xc7   :  { %v1622_v15 = vpop.permute.xlu0 %313  ;;  %v1624_v16 = vpop.permute.xlu1 %318 }
  0xc9   :  { %636 = vmatmul.mubr.f32.gmra.mrb[48].mxu0 %v163_v21  ;;  %1170 = vmatmul.mubr.f32.gmra.mrb[48].mxu1 %v180_v0 }
  0xca   :  { %640 = vmatprep.mubr.f32.mxu0 %v167_v22  ;;  %1172 = vmatprep.mubr.f32.mxu1 %v183_v23 }
  0xcd   :  { %641 = vmatmul.mubr.f32.gmra.mrb[50].mxu0 %v166_v24  ;;  %1173 = vmatmul.mubr.f32.gmra.mrb[50].mxu1 %v186_v25  ;;  %v1630_v24 = vpop.permute.xlu0 %323  ;;  %v1632_v25 = vpop.permute.xlu1 %328 }
  0xce   :  { %645 = vmatprep.mubr.f32.mxu0 %v170_v26  ;;  %1175 = vmatprep.mubr.f32.mxu1 %v189_v27 }
  0xd1   :  { %646 = vmatmul.mubr.f32.gmra.mrb[52].mxu0 %v169_v28  ;;  %1176 = vmatmul.mubr.f32.gmra.mrb[52].mxu1 %v192_v29 }
  0xd2   :  { %650 = vmatprep.mubr.f32.mxu0 %v173_v30  ;;  %1178 = vmatprep.mubr.f32.mxu1 %v195_v31 }
  0xd5   :  { %651 = vmatmul.mubr.f32.gmra.mrb[54].mxu0 %v172_v32  ;;  %1179 = vmatmul.mubr.f32.gmra.mrb[54].mxu1 %v198_v33 }
  0xd6   :  { %655 = vmatprep.mubr.f32.mxu0 %v176_v34  ;;  %1181 = vmatprep.mubr.f32.mxu1 %v201_v35  ;;  %v1638_v34 = vpop.permute.xlu0 %333  ;;  %v1640_v35 = vpop.permute.xlu1 %338 }
  0xd9   :  { %656 = vmatmul.mubr.f32.gmra.mrb[56].mxu0 %v175_v36  ;;  %1182 = vmatmul.mubr.f32.gmra.mrb[56].mxu1 %v204_v37 }
  0xda   :  { %660 = vmatprep.mubr.f32.mxu0 %v179_v38  ;;  %1184 = vmatprep.mubr.f32.mxu1 %v207_v39 }
  0xdd   :  { %661 = vmatmul.mubr.f32.gmra.mrb[58].mxu0 %v178_v40  ;;  %1185 = vmatmul.mubr.f32.gmra.mrb[58].mxu1 %v210_v41 }
 0x13c   :  { %v517_v50 = vpop.f32.mrb[0].mxu0  ;;  %v1602_v51 = vpop.f32.mrb[0].mxu1 }
 0x13d   :  { %v519_v52 = vpop.f32.mrb[1].mxu0  ;;  %v669_v53 = vpop.f32.mrb[1].mxu1  ;;  %v518_v37 = vadd.f32 %v517_v50, %v254_v42 }
 0x13e   :  { %v1646_v42 = vpop.permute.xlu1 %348 }
 0x140   :  { %v522_v54 = vpop.f32.mrb[2].mxu0  ;;  %v1604_v55 = vpop.f32.mrb[2].mxu1 }
 0x141   :  { %v524_v56 = vpop.f32.mrb[3].mxu0  ;;  %v674_v57 = vpop.f32.mrb[3].mxu1  ;;  %v523_v36 = vadd.f32 %v522_v54, %v259_v44 }
 0x142   :  { %v1644_v44 = vpop.permute.xlu0 %343 }
 0x144   :  { %v527_v60 = vpop.f32.mrb[4].mxu0  ;;  %v1610_v61 = vpop.f32.mrb[4].mxu1 }
 0x145   :  { %v529_v62 = vpop.f32.mrb[5].mxu0  ;;  %v679_v63 = vpop.f32.mrb[5].mxu1  ;;  %v528_v57 = vadd.f32 %v527_v60, %v1590_v43 }
 0x148   :  { %v532_v1 = vpop.f32.mrb[6].mxu0  ;;  %v1612_v2 = vpop.f32.mrb[6].mxu1 }
 0x149   :  { %v534_v3 = vpop.f32.mrb[7].mxu0  ;;  %v684_v4 = vpop.f32.mrb[7].mxu1  ;;  %v533_v56 = vadd.f32 %v532_v1, %v1592_v45 }
 0x14c   :  { %v537_v7 = vpop.f32.mrb[8].mxu0  ;;  %v1618_v8 = vpop.f32.mrb[8].mxu1 }
 0x14d   :  { %v539_v9 = vpop.f32.mrb[9].mxu0  ;;  %v689_v10 = vpop.f32.mrb[9].mxu1  ;;  %v538_v54 = vadd.f32 %v537_v7, %v1594_v46 }
 0x14e   :  { %v1652_v46 = vpop.permute.xlu0 %353  ;;  %v1654_v7 = vpop.permute.xlu1 %358 }
 0x150   :  { %v542_v11 = vpop.f32.mrb[10].mxu0  ;;  %v1620_v12 = vpop.f32.mrb[10].mxu1 }
 0x151   :  { %v544_v13 = vpop.f32.mrb[11].mxu0  ;;  %v694_v14 = vpop.f32.mrb[11].mxu1  ;;  %v543_v50 = vadd.f32 %v542_v11, %v1596_v47 }
 0x154   :  { %v547_v17 = vpop.f32.mrb[12].mxu0  ;;  %v1626_v18 = vpop.f32.mrb[12].mxu1 }
 0x155   :  { %v549_v19 = vpop.f32.mrb[13].mxu0  ;;  %v699_v20 = vpop.f32.mrb[13].mxu1 }
 0x156   :  { %v548_v20 = vadd.f32 %v547_v17, %v1598_v48 }
 0x158   :  { %v552_v21 = vpop.f32.mrb[14].mxu0  ;;  %v1628_v0 = vpop.f32.mrb[14].mxu1 }
 0x159   :  { %v554_v22 = vpop.f32.mrb[15].mxu0  ;;  %v704_v23 = vpop.f32.mrb[15].mxu1  ;;  %v553_v19 = vadd.f32 %v552_v21, %v1600_v49 }
 0x15c   :  { %v557_v26 = vpop.f32.mrb[16].mxu0  ;;  %v1634_v27 = vpop.f32.mrb[16].mxu1 }
 0x15d   :  { %v559_v28 = vpop.f32.mrb[17].mxu0  ;;  %v709_v29 = vpop.f32.mrb[17].mxu1 }
 0x160   :  { %v562_v30 = vpop.f32.mrb[18].mxu0  ;;  %v1636_v31 = vpop.f32.mrb[18].mxu1 }
 0x161   :  { %v564_v32 = vpop.f32.mrb[19].mxu0  ;;  %v714_v33 = vpop.f32.mrb[19].mxu1 }
 0x162   :  { %v563_v32 = vadd.f32 %v562_v30, %v1608_v59  ;;  %v558_v33 = vadd.f32 %v557_v26, %v1606_v58  ;;  %v1660_v58 = vpop.permute.xlu0 %363  ;;  %v1662_v26 = vpop.permute.xlu1 %368 }
 0x164   :  { %v567_v38 = vpop.f32.mrb[20].mxu0  ;;  %v1129_v39 = vpop.f32.mrb[20].mxu1 }
 0x165   :  { %v788_v40 = vadd.f32 %v1129_v39, %v523_v36  ;;  %v569_v41 = vpop.f32.mrb[21].mxu0  ;;  %v782_v52 = vpop.f32.mrb[21].mxu1 }
 0x166   :  { %v783_v53 = vadd.f32 %v782_v52, %v518_v37 }
 0x167   :  { %982 = vst [vmem:[#allocation7 + $0x8] sm:$0xff] %v788_v40  ;;  %v568_v40 = vadd.f32 %v567_v38, %v1614_v5 }
 0x168   :  { %981 = vst [vmem:[#allocation7] sm:$0xff] %v783_v53  ;;  %v572_v62 = vpop.f32.mrb[22].mxu0  ;;  %v1132_v63 = vpop.f32.mrb[22].mxu1 }
 0x169   :  { %v798_v3 = vadd.f32 %v1132_v63, %v533_v56  ;;  %v574_v4 = vpop.f32.mrb[23].mxu0  ;;  %v792_v9 = vpop.f32.mrb[23].mxu1  ;;  %v573_v39 = vadd.f32 %v572_v62, %v1616_v6 }
 0x16a   :  { %v793_v10 = vadd.f32 %v792_v9, %v528_v57 }
 0x16b   :  { %984 = vst [vmem:[#allocation7 + $0x18] sm:$0xff] %v798_v3 }
 0x16c   :  { %983 = vst [vmem:[#allocation7 + $0x10] sm:$0xff] %v793_v10  ;;  %v577_v45 = vpop.f32.mrb[24].mxu0  ;;  %v1135_v1 = vpop.f32.mrb[24].mxu1 }
 0x16d   :  { %v808_v43 = vadd.f32 %v1135_v1, %v543_v50  ;;  %v579_v60 = vpop.f32.mrb[25].mxu0  ;;  %v802_v13 = vpop.f32.mrb[25].mxu1  ;;  %v578_v63 = vadd.f32 %v577_v45, %v1622_v15 }
 0x16e   :  { %v803_v14 = vadd.f32 %v802_v13, %v538_v54  ;;  %v374_v15 = vpop.permute.xlu0 %373  ;;  %v1668_v45 = vpop.permute.xlu1 %378 }
 0x16f   :  { %986 = vst [vmem:[#allocation7 + $0x28] sm:$0xff] %v808_v43 }
 0x170   :  { %985 = vst [vmem:[#allocation7 + $0x20] sm:$0xff] %v803_v14  ;;  %v582_v22 = vpop.f32.mrb[26].mxu0  ;;  %v1138_v23 = vpop.f32.mrb[26].mxu1 }
 0x171   :  { %v818_v28 = vadd.f32 %v1138_v23, %v553_v19  ;;  %v584_v47 = vpop.f32.mrb[27].mxu0  ;;  %v812_v11 = vpop.f32.mrb[27].mxu1  ;;  %v583_v57 = vadd.f32 %v582_v22, %v1624_v16 }
 0x172   :  { %v813_v29 = vadd.f32 %v812_v11, %v548_v20 }
 0x173   :  { %988 = vst [vmem:[#allocation7 + $0x38] sm:$0xff] %v818_v28 }
 0x174   :  { %987 = vst [vmem:[#allocation7 + $0x30] sm:$0xff] %v813_v29  ;;  %v587_v49 = vpop.f32.mrb[28].mxu0  ;;  %v1141_v21 = vpop.f32.mrb[28].mxu1 }
 0x175   :  { %v828_v48 = vadd.f32 %v1141_v21, %v563_v32  ;;  %v589_v17 = vpop.f32.mrb[29].mxu0  ;;  %v822_v36 = vpop.f32.mrb[29].mxu1  ;;  %v588_v10 = vadd.f32 %v587_v49, %v1630_v24 }
 0x176   :  { %v823_v37 = vadd.f32 %v822_v36, %v558_v33  ;;  %v1674_v49 = vpop.permute.xlu0 %383 }
 0x177   :  { %990 = vst [vmem:[#allocation7 + $0x48] sm:$0xff] %v828_v48 }
 0x178   :  { %989 = vst [vmem:[#allocation7 + $0x40] sm:$0xff] %v823_v37  ;;  %v592_v41 = vpop.f32.mrb[30].mxu0  ;;  %v1144_v52 = vpop.f32.mrb[30].mxu1 }
 0x179   :  { %v838_v53 = vadd.f32 %v1144_v52, %v573_v39  ;;  %v594_v59 = vpop.f32.mrb[31].mxu0  ;;  %v832_v30 = vpop.f32.mrb[31].mxu1  ;;  %v593_v9 = vadd.f32 %v592_v41, %v1632_v25 }
 0x17a   :  { %v833_v56 = vadd.f32 %v832_v30, %v568_v40  ;;  %v1680_v59 = vpop.permute.xlu0 %393 }
 0x17b   :  { %992 = vst [vmem:[#allocation7 + $0x58] sm:$0xff] %v838_v53 }
 0x17c   :  { %991 = vst [vmem:[#allocation7 + $0x50] sm:$0xff] %v833_v56  ;;  %v597_v6 = vpop.f32.mrb[32].mxu0  ;;  %v1147_v62 = vpop.f32.mrb[32].mxu1 }
 0x17d   :  { %v848_v5 = vadd.f32 %v1147_v62, %v583_v57  ;;  %v599_v38 = vpop.f32.mrb[33].mxu0  ;;  %v842_v3 = vpop.f32.mrb[33].mxu1  ;;  %v598_v14 = vadd.f32 %v597_v6, %v1638_v34 }
 0x17e   :  { %v843_v4 = vadd.f32 %v842_v3, %v578_v63  ;;  %v1676_v34 = vpop.permute.xlu1 %388 }
 0x17f   :  { %994 = vst [vmem:[#allocation7 + $0x68] sm:$0xff] %v848_v5 }
 0x180   :  { %993 = vst [vmem:[#allocation7 + $0x60] sm:$0xff] %v843_v4  ;;  %v602_v50 = vpop.f32.mrb[34].mxu0  ;;  %v1150_v54 = vpop.f32.mrb[34].mxu1 }
 0x181   :  { %v858_v1 = vadd.f32 %v1150_v54, %v593_v9  ;;  %v604_v16 = vpop.f32.mrb[35].mxu0  ;;  %v852_v43 = vpop.f32.mrb[35].mxu1  ;;  %v603_v13 = vadd.f32 %v602_v50, %v1640_v35 }
 0x182   :  { %v853_v60 = vadd.f32 %v852_v43, %v588_v10  ;;  %v1682_v30 = vpop.permute.xlu1 %398  ;;  %v404_v10 = vpop.permute.xlu0 %403 }
 0x183   :  { %996 = vst [vmem:[#allocation7 + $0x78] sm:$0xff] %v858_v1 }
 0x184   :  { %995 = vst [vmem:[#allocation7 + $0x70] sm:$0xff] %v853_v60  ;;  %v607_v25 = vpop.f32.mrb[36].mxu0  ;;  %v1153_v19 = vpop.f32.mrb[36].mxu1 }
 0x185   :  { %v868_v20 = vadd.f32 %v1153_v19, %v603_v13  ;;  %v609_v24 = vpop.f32.mrb[37].mxu0  ;;  %v862_v22 = vpop.f32.mrb[37].mxu1  ;;  %v608_v28 = vadd.f32 %v607_v25, %v1644_v44 }
 0x186   :  { %v863_v23 = vadd.f32 %v862_v22, %v598_v14  ;;  %v409_v50 = vpop.permute.xlu1 %408  ;;  %v414_v14 = vpop.permute.xlu0 %413 }
 0x187   :  { %998 = vst [vmem:[#allocation7 + $0x88] sm:$0xff] %v868_v20  ;;  %v673_v13 = vadd.f32 %v1604_v55, %v409_v50  ;;  %v668_v20 = vadd.f32 %v1602_v51, %v404_v10  ;;  %v678_v55 = vadd.f32 %v1610_v61, %v414_v14 }
 0x188   :  { %997 = vst [vmem:[#allocation7 + $0x80] sm:$0xff] %v863_v23  ;;  %v612_v47 = vpop.f32.mrb[38].mxu0  ;;  %v1156_v11 = vpop.f32.mrb[38].mxu1 }
 0x189   :  { %v613_v29 = vadd.f32 %v612_v47, %v1646_v42  ;;  %v614_v32 = vpop.f32.mrb[39].mxu0  ;;  %v872_v35 = vpop.f32.mrb[39].mxu1 }
 0x18a   :  { %v873_v33 = vadd.f32 %v872_v35, %v608_v28  ;;  %v419_v25 = vpop.permute.xlu1 %418 }
 0x18b   :  { %v878_v21 = vadd.f32 %v1156_v11, %v613_v29  ;;  %v424_v29 = vpop.permute.xlu0 %423 }
 0x18c   :  { %999 = vst [vmem:[#allocation7 + $0x90] sm:$0xff] %v873_v33  ;;  %v617_v48 = vpop.f32.mrb[40].mxu0  ;;  %v1159_v17 = vpop.f32.mrb[40].mxu1 }
 0x18d   :  { %1000 = vst [vmem:[#allocation7 + $0x98] sm:$0xff] %v878_v21  ;;  %v618_v36 = vadd.f32 %v617_v48, %v1652_v46  ;;  %v619_v44 = vpop.f32.mrb[41].mxu0  ;;  %v882_v37 = vpop.f32.mrb[41].mxu1 }
 0x18e   :  { %v429_v32 = vpop.permute.xlu1 %428 }
 0x18f   :  { %v883_v39 = vadd.f32 %v882_v37, %v618_v36  ;;  %v693_v44 = vadd.f32 %v1620_v12, %v429_v32  ;;  %v434_v37 = vpop.permute.xlu0 %433 }
 0x190   :  { %v622_v40 = vpop.f32.mrb[42].mxu0  ;;  %v1162_v41 = vpop.f32.mrb[42].mxu1 }
 0x191   :  { %1001 = vst [vmem:[#allocation7 + $0xa0] sm:$0xff] %v883_v39  ;;  %v623_v42 = vadd.f32 %v622_v40, %v1654_v7  ;;  %v624_v52 = vpop.f32.mrb[43].mxu0  ;;  %v892_v53 = vpop.f32.mrb[43].mxu1  ;;  %v688_v40 = vadd.f32 %v1618_v8, %v424_v29 }
 0x193   :  { %v888_v56 = vadd.f32 %v1159_v17, %v623_v42 }
 0x194   :  { %v627_v57 = vpop.f32.mrb[44].mxu0  ;;  %v1165_v63 = vpop.f32.mrb[44].mxu1 }
 0x195   :  { %1002 = vst [vmem:[#allocation7 + $0xa8] sm:$0xff] %v888_v56  ;;  %v628_v46 = vadd.f32 %v627_v57, %v1660_v58  ;;  %v629_v6 = vpop.f32.mrb[45].mxu0  ;;  %v902_v62 = vpop.f32.mrb[45].mxu1 }
 0x196   :  { %v698_v6 = vadd.f32 %v1626_v18, %v434_v37 }
 0x197   :  { %v893_v5 = vadd.f32 %v892_v53, %v628_v46 }
 0x198   :  { %v632_v38 = vpop.f32.mrb[46].mxu0  ;;  %v1168_v3 = vpop.f32.mrb[46].mxu1 }
 0x199   :  { %1003 = vst [vmem:[#allocation7 + $0xb0] sm:$0xff] %v893_v5  ;;  %v633_v7 = vadd.f32 %v632_v38, %v1662_v26  ;;  %v634_v4 = vpop.f32.mrb[47].mxu0  ;;  %v912_v9 = vpop.f32.mrb[47].mxu1 }
 0x19b   :  { %v898_v54 = vadd.f32 %v1162_v41, %v633_v7 }
 0x19c   :  { %v637_v1 = vpop.f32.mrb[48].mxu0  ;;  %v1686_v16 = vpop.f32.mrb[48].mxu1 }
 0x19d   :  { %1004 = vst [vmem:[#allocation7 + $0xb8] sm:$0xff] %v898_v54  ;;  %v638_v43 = vadd.f32 %v637_v1, %v374_v15  ;;  %v639_v60 = vpop.f32.mrb[49].mxu0  ;;  %v922_v58 = vpop.f32.mrb[49].mxu1  ;;  %v683_v15 = vadd.f32 %v1612_v2, %v419_v25 }
 0x19e   :  { %v439_v2 = vpop.permute.xlu1 %438 }
 0x19f   :  { %v903_v19 = vadd.f32 %v902_v62, %v638_v43  ;;  %v703_v57 = vadd.f32 %v1628_v0, %v439_v2 }
 0x1a0   :  { %v642_v26 = vpop.f32.mrb[50].mxu0  ;;  %v1174_v24 = vpop.f32.mrb[50].mxu1 }
 0x1a1   :  { %1005 = vst [vmem:[#allocation7 + $0xc0] sm:$0xff] %v903_v19  ;;  %v643_v22 = vadd.f32 %v642_v26, %v1668_v45  ;;  %v938_v23 = vadd.f32 %v1174_v24, %v673_v13  ;;  %v644_v28 = vpop.f32.mrb[51].mxu0  ;;  %v932_v47 = vpop.f32.mrb[51].mxu1 }
 0x1a2   :  { %v933_v11 = vadd.f32 %v932_v47, %v668_v20  ;;  %v449_v12 = vpop.permute.xlu1 %448 }
 0x1a3   :  { %v908_v35 = vadd.f32 %v1165_v63, %v643_v22  ;;  %1012 = vst [vmem:[#allocation7 + $0xf8] sm:$0xff] %v938_v23  ;;  %v444_v63 = vpop.permute.xlu0 %443 }
 0x1a4   :  { %1011 = vst [vmem:[#allocation7 + $0xf0] sm:$0xff] %v933_v11  ;;  %v647_v33 = vpop.f32.mrb[52].mxu0  ;;  %v1177_v51 = vpop.f32.mrb[52].mxu1  ;;  %v708_v0 = vadd.f32 %v1634_v27, %v444_v63 }
 0x1a5   :  { %1006 = vst [vmem:[#allocation7 + $0xc8] sm:$0xff] %v908_v35  ;;  %v648_v21 = vadd.f32 %v647_v33, %v1674_v49  ;;  %v948_v48 = vadd.f32 %v1177_v51, %v683_v15  ;;  %v649_v45 = vpop.f32.mrb[53].mxu0  ;;  %v942_v17 = vpop.f32.mrb[53].mxu1 }
 0x1a6   :  { %v943_v36 = vadd.f32 %v942_v17, %v678_v55 }
 0x1a7   :  { %v913_v39 = vadd.f32 %v912_v9, %v648_v21  ;;  %1014 = vst [vmem:[#allocation7 + $0x108] sm:$0xff] %v948_v48  ;;  %v713_v9 = vadd.f32 %v1636_v31, %v449_v12 }
 0x1a8   :  { %1013 = vst [vmem:[#allocation7 + $0x100] sm:$0xff] %v943_v36  ;;  %v652_v61 = vpop.f32.mrb[54].mxu0  ;;  %v1180_v41 = vpop.f32.mrb[54].mxu1 }
 0x1a9   :  { %1007 = vst [vmem:[#allocation7 + $0xd0] sm:$0xff] %v913_v39  ;;  %v653_v42 = vadd.f32 %v652_v61, %v1676_v34  ;;  %v958_v52 = vadd.f32 %v1180_v41, %v693_v44  ;;  %v654_v49 = vpop.f32.mrb[55].mxu0  ;;  %v952_v53 = vpop.f32.mrb[55].mxu1 }
 0x1aa   :  { %v953_v56 = vadd.f32 %v952_v53, %v688_v40 }
 0x1ab   :  { %v918_v46 = vadd.f32 %v1168_v3, %v653_v42  ;;  %1016 = vst [vmem:[#allocation7 + $0x118] sm:$0xff] %v958_v52 }
 0x1ac   :  { %1015 = vst [vmem:[#allocation7 + $0x110] sm:$0xff] %v953_v56  ;;  %v657_v8 = vpop.f32.mrb[56].mxu0  ;;  %v1183_v62 = vpop.f32.mrb[56].mxu1 }
 0x1ad   :  { %1008 = vst [vmem:[#allocation7 + $0xd8] sm:$0xff] %v918_v46  ;;  %v658_v5 = vadd.f32 %v657_v8, %v1680_v59  ;;  %v968_v38 = vadd.f32 %v1183_v62, %v703_v57  ;;  %v659_v34 = vpop.f32.mrb[57].mxu0  ;;  %v962_v7 = vpop.f32.mrb[57].mxu1 }
 0x1ae   :  { %v963_v4 = vadd.f32 %v962_v7, %v698_v6 }
 0x1af   :  { %v923_v10 = vadd.f32 %v922_v58, %v658_v5  ;;  %1018 = vst [vmem:[#allocation7 + $0x128] sm:$0xff] %v968_v38 }
 0x1b0   :  { %1017 = vst [vmem:[#allocation7 + $0x120] sm:$0xff] %v963_v4  ;;  %v662_v3 = vpop.f32.mrb[58].mxu0  ;;  %v1186_v50 = vpop.f32.mrb[58].mxu1 }
 0x1b1   :  { %1009 = vst [vmem:[#allocation7 + $0xe0] sm:$0xff] %v923_v10  ;;  %v663_v18 = vadd.f32 %v662_v3, %v1682_v30  ;;  %v978_v54 = vadd.f32 %v1186_v50, %v713_v9  ;;  %v664_v59 = vpop.f32.mrb[59].mxu0  ;;  %v972_v1 = vpop.f32.mrb[59].mxu1 }
 0x1b2   :  { %v973_v43 = vadd.f32 %v972_v1, %v708_v0 }
 0x1b3   :  { %v928_v60 = vadd.f32 %v1686_v16, %v663_v18  ;;  %1020 = vst [vmem:[#allocation7 + $0x138] sm:$0xff] %v978_v54 }
 0x1b4   :  { %1019 = vst [vmem:[#allocation7 + $0x130] sm:$0xff] %v973_v43 }
 0x1b5   :  { %1010 = vst [vmem:[#allocation7 + $0xe8] sm:$0xff] %v928_v60 }
 0x1b6   :  { %1365 = shalt.err (!%p1362_p6)
}
 0x1b7   :  { %s1366_s14 = scalar_lea.hbm %s1722_s3, 5120 }
 0x1b8   :  { %p1367_p7 = scmp.ne.s32.totalorder %s1722_s3, %s1366_s14  ;;  %p1370_p8 = scmp.lt.u32.totalorder %s1366_s14, %s1722_s3 }
 0x1ba   :  { %p1372_p9 = pnand %p1370_p8, %p1367_p7 }
 0x1bc   :  { %1375 = shalt.err (!%p1372_p9)
}
 0x1bd   :  { %1032 = dma.vmem_to_hbm [thread:$0]  %s1027_s11, 5120, %s1722_s3, [#allocation4], %s1383_s22, %s1383_s22, %s1384_s23  }
 0x1be   :  { %1380 = dma.done.wait [#allocation4], 5120  }
 0x1bf   :  { %1381 = vsyncadd [#allocation4], 4294962176 }
 0x1c0   :  { %1036 = vsyncpa [#allocation3], 1 }
 0x1c1   :  { %1037 = vsyncpa [#allocation6], 1 }
 0x1c2   :  { %1038 = vsyncpa [#allocation4], 1 }

</bundles_post_ra>
